<compile_context>
chip_gen: v6e
topology: v6e:2x2x1
jax: 0.10.0
libtpu: 0.0.40
codegen_flags: <defaults>
</compile_context>

<pallas_src>
import jax
import jax.numpy as jnp
from jax.experimental import pallas as pl
from jax.experimental.pallas import tpu as pltpu


def _round_up(x, m):
    return ((x + m - 1) // m) * m


def make_fused_kernel(max_gram, seq_len, vec_size, batch_tile, fl_pad):
    """All-gram conv + bias + ReLU + mask + max-over-time for one batch tile."""
    K = max_gram
    rows = batch_tile * seq_len

    def kernel(x_ref, wconv_ref, bconv_ref, mask_ref, feat_ref):
        # x_ref:     (TB*S, D)  bf16  flattened activations (reshaped on host)
        # wconv_ref: (K*D, FLp) bf16  all grams packed; zero rows for k >= gram
        # bconv_ref: (1, FLp)   f32   packed biases (zero in padded columns)
        # mask_ref:  (S, FLp)   f32   1.0 where window start t is valid
        # feat_ref:  (TB, FLp)  f32   pooled features (padded cols sliced on host)

        # Upcast once so the XLU sublane rotates below act on clean 32-bit
        # sublanes (odd shifts on 16-packed bf16 would force unpack/repack).
        x = x_ref[...].astype(jnp.float32)                       # (TB*S, D)

        # im2col along lanes: lane block k holds x[(r + k) mod rows].  Rows
        # whose window crosses a sequence boundary are zeroed post-ReLU below.
        shifted = [x]
        for k in range(1, K):
            shifted.append(pltpu.roll(x, shift=rows - k, axis=0))
        xm = jnp.concatenate(shifted, axis=-1).astype(jnp.bfloat16)  # (TB*S, K*D)

        # Every gram's conv in one lane-dense MXU matmul (bf16 in, f32 acc;
        # N = fl_pad is a multiple of 128 -> unmasked results/stores).
        y = jnp.dot(xm, wconv_ref[...], preferred_element_type=jnp.float32)
        y = jnp.maximum(y + bconv_ref[...], 0.0)                 # bias + ReLU

        # (TB*S, FLp) -> (TB, S, FLp): pure vreg regrouping when S % 8 == 0.
        y = y.reshape(batch_tile, seq_len, fl_pad)

        # Precomputed validity mask (constant across the grid, hoisted to the
        # host).  Zero is safe post-ReLU because every true max is >= 0.
        y = y * mask_ref[...][None, :, :]

        feat_ref[...] = jnp.max(y, axis=1)                       # (TB, FLp)

    return kernel


def _pack_conv_params(params, min_gram, max_gram, filters, vec_size, fl_pad):
    """Pack all Conv2d grams into one (K*D, FLp) im2col weight + (1, FLp) bias."""
    K = max_gram
    n_grams = max_gram - min_gram + 1
    w_blocks = []
    for g in range(n_grams):
        a = min_gram + g
        w = params["conv_w"][g]                        # PyTorch (F, 1, a, D)
        w = jnp.transpose(w[:, 0], (1, 2, 0))          # (a, D, F)
        w = jnp.pad(w, ((0, K - a), (0, 0), (0, 0)))   # zero unused shifts
        w_blocks.append(w.reshape(K * vec_size, filters))
    w_conv = jnp.concatenate(w_blocks, axis=1)         # (K*D, FL)
    b_conv = jnp.concatenate(
        [b.reshape(1, filters) for b in params["conv_b"]], axis=1)  # (1, FL)
    # Zero-pad to 128 output lanes: free MXU compute, lane-dense stores.  The
    # padded bias columns MUST stay zero so padded feat columns stay 0.
    pad = fl_pad - w_conv.shape[1]
    w_conv = jnp.pad(w_conv, ((0, 0), (0, pad))).astype(jnp.bfloat16)
    b_conv = jnp.pad(b_conv, ((0, 0), (0, pad))).astype(jnp.float32)
    return w_conv, b_conv


def _build_time_mask(seq_len, min_gram, max_gram, filters, fl_pad):
    """(S, FLp) f32 mask: 1.0 where window start t fits gram `a` in the sequence."""
    n_grams = max_gram - min_gram + 1
    feature_len = n_grams * filters
    t = jnp.arange(seq_len)[:, None]                              # (S, 1)
    gram = min_gram + jnp.arange(feature_len) // filters          # (FL,)
    valid = (t <= (seq_len - gram)[None, :]).astype(jnp.float32)  # (S, FL)
    return jnp.pad(valid, ((0, 0), (0, fl_pad - feature_len)))


def _vmem_bytes_estimate(batch_tile, seq_len, vec_size, max_gram, fl_pad):
    rows = batch_tile * seq_len
    x_block = rows * vec_size * 2                       # bf16 input block
    im2col = rows * max_gram * vec_size * (4 + 2)       # f32 copies + bf16 xm
    y_f32 = rows * fl_pad * 4
    feat_block = batch_tile * fl_pad * 4
    consts = (max_gram * vec_size * fl_pad * 2 + 2 * fl_pad * 4
              + seq_len * fl_pad * 4)
    # Input/output blocks are double-buffered by the BlockSpec pipeline.
    return 2 * x_block + 2 * feat_block + 2 * consts + im2col + y_f32


def textcnn_forward(ids, params, min_gram, max_gram, filters, *, batch_tile=512):
    """ids: (B, S) int32; params hold PyTorch-layout weights (see __main__)."""
    w2v = params["w2v"]
    vec_size = w2v.shape[1]
    B, S = ids.shape
    n_grams = max_gram - min_gram + 1
    feature_len = n_grams * filters
    fl_pad = max(128, _round_up(feature_len, 128))
    K = max_gram

    if S < max_gram:
        raise ValueError(
            f"seq_len={S} < max_gram={max_gram}: the reference PyTorch Conv2d "
            "would fail; refusing to silently return zero features.")

    # Big tiles amortize the ~600-cycle per-step overhead; clamp so tiny
    # batches do not over-pad.  Multiple of 8 keeps blocks sublane-aligned
    # (>=16 recommended on v6e/v7x so M = TB*S is a multiple of 256).
    tb = min(batch_tile, _round_up(B, 8))
    tb = _round_up(tb, 8)
    b_pad = _round_up(B, tb)

    # TODO(synk): the frozen-embedding gather stays in XLA.  Fusing it with a
    # per-token make_async_copy (ids via scalar prefetch, w2v in HBM) would
    # halve HBM activation bytes, but one DMA per token makes the scalar issue
    # loop (~tens of cycles x TB*S rows per step) the bottleneck at realistic
    # tiles; it needs a paged/segmented gather layout to pay off.
    emb = jnp.take(w2v, ids, axis=0).astype(jnp.bfloat16)         # (B, S, D)
    if b_pad != B:
        emb = jnp.pad(emb, ((0, b_pad - B), (0, 0), (0, 0)))
    # Flatten batch into the sublane/M dim on the host (free layout plumbing)
    # so the kernel never reshapes its input block.
    x2d = emb.reshape(b_pad * S, vec_size)                        # (B_pad*S, D)

    w_conv, b_conv = _pack_conv_params(params, min_gram, max_gram, filters,
                                       vec_size, fl_pad)
    mask = _build_time_mask(S, min_gram, max_gram, filters, fl_pad)

    # Explicit VMEM budget (floor 32 MiB: v5e's scoped default is only 16 MiB).
    # On v7x (64 MiB physical) keep tb so the estimate stays well under 48 MiB.
    vmem_limit = int(min(max(32 * 2 ** 20,
                             2 * _vmem_bytes_estimate(tb, S, vec_size, K, fl_pad)),
                         96 * 2 ** 20))

    kernel = make_fused_kernel(K, S, vec_size, tb, fl_pad)
    feat = pl.pallas_call(
        kernel,
        out_shape=jax.ShapeDtypeStruct((b_pad, fl_pad), jnp.float32),
        grid=(b_pad // tb,),
        in_specs=[
            pl.BlockSpec((tb * S, vec_size), lambda i: (i, 0)),
            pl.BlockSpec((K * vec_size, fl_pad), lambda i: (0, 0)),
            pl.BlockSpec((1, fl_pad), lambda i: (0, 0)),
            pl.BlockSpec((S, fl_pad), lambda i: (0, 0)),
        ],
        out_specs=pl.BlockSpec((tb, fl_pad), lambda i: (i, 0)),
        compiler_params=pltpu.CompilerParams(
            # Batch axis is independent -> shards across v7x's 2 TensorCores
            # (no-op on v5e/v6e).  Keep grid >= 2 on v7x when batch allows.
            dimension_semantics=("parallel",),
            vmem_limit_bytes=vmem_limit,
        ),
    )(x2d, w_conv, b_conv, mask)

    conv_out = feat[:B, :feature_len]
    # Dropout(p=0.5) is identity at inference.  The tiny FC (FL -> out_dim) +
    # Sigmoid epilogue is de-fused to XLA: feat already lands in HBM, so this
    # costs no extra traffic and avoids a lane-masked (TB, out_dim) store.
    logits = jax.nn.sigmoid(
        conv_out @ params["fc_w"].T.astype(jnp.float32)
        + params["fc_b"].reshape(1, -1).astype(jnp.float32))
    prediction = logits >= 0.5                                    # torch.ge(y, 0.5)
    return {"logits": logits, "prediction": prediction, "conv_out": conv_out}


def textcnn_reference(ids, params, min_gram, max_gram, filters):
    """Pure-JAX reference (same bf16 inputs / f32 accumulation)."""
    emb = jnp.take(params["w2v"], ids, axis=0)
    emb = emb.astype(jnp.bfloat16).astype(jnp.float32)
    B, S, D = emb.shape
    feats = []
    for g in range(max_gram - min_gram + 1):
        a = min_gram + g
        w = jnp.transpose(params["conv_w"][g][:, 0], (1, 2, 0))
        w = w.astype(jnp.bfloat16).astype(jnp.float32)            # (a, D, F)
        s_out = S - a + 1
        acc = jnp.zeros((B, s_out, filters), jnp.float32)
        for k in range(a):
            acc = acc + jnp.einsum("bsd,df->bsf", emb[:, k:k + s_out], w[k],
                                   preferred_element_type=jnp.float32)
        y = jnp.maximum(acc + params["conv_b"][g].reshape(1, 1, filters), 0.0)
        feats.append(jnp.max(y, axis=1))
    conv_out = jnp.concatenate(feats, axis=1)
    z = conv_out @ params["fc_w"].T + params["fc_b"].reshape(1, -1)
    return conv_out, jax.nn.sigmoid(z)


if __name__ == "__main__":
    # Small synthetic config: vec_size=32, filters=8, grams 2..4, output_dim=4.
    B, S = 2, 16
    vocab, D = 50, 32
    filters = 8
    min_gram, max_gram = 2, 4
    output_dim = 4
    n_grams = max_gram - min_gram + 1
    feature_len = n_grams * filters

    key = jax.random.PRNGKey(0)
    keys = jax.random.split(key, 16)

    w2v = 0.1 * jax.random.normal(keys[0], (vocab, D), jnp.float32)
    conv_w, conv_b = [], []
    for g, a in enumerate(range(min_gram, max_gram + 1)):
        # PyTorch Conv2d weight layout: (F, 1, a, D); bias: (F,)
        conv_w.append(0.1 * jax.random.normal(keys[1 + g], (filters, 1, a, D),
                                              jnp.float32))
        conv_b.append(0.1 * jax.random.normal(keys[5 + g], (filters,),
                                              jnp.float32))
    # PyTorch Linear layout: weight (out, in), bias (out,)
    fc_w = 0.1 * jax.random.normal(keys[9], (output_dim, feature_len), jnp.float32)
    fc_b = 0.1 * jax.random.normal(keys[10], (output_dim,), jnp.float32)

    params = {"w2v": w2v, "conv_w": conv_w, "conv_b": conv_b,
              "fc_w": fc_w, "fc_b": fc_b}
    ids = jax.random.randint(keys[11], (B, S), 0, vocab, dtype=jnp.int32)

    out = textcnn_forward(ids, params, min_gram, max_gram, filters)
    jax.block_until_ready(out["logits"])
    jax.block_until_ready(out["prediction"])

    # Correctness check against a pure-JAX reference.
    ref_feat, ref_logits = textcnn_reference(ids, params, min_gram, max_gram,
                                             filters)
    feat_err = float(jnp.max(jnp.abs(out["conv_out"] - ref_feat)))
    logit_err = float(jnp.max(jnp.abs(out["logits"] - ref_logits)))
    assert feat_err < 2e-3, f"conv feature mismatch: {feat_err}"
    assert logit_err < 5e-3, f"logit mismatch: {logit_err}"
    assert out["logits"].shape == (B, output_dim)
    assert out["prediction"].shape == (B, output_dim)

    # Second check: batch not a multiple of the tile and grid > 1 (exercises
    # padding and the "parallel" batch grid axis).
    B2 = 20
    ids2 = jax.random.randint(keys[12], (B2, S), 0, vocab, dtype=jnp.int32)
    out2 = textcnn_forward(ids2, params, min_gram, max_gram, filters,
                           batch_tile=8)
    jax.block_until_ready(out2["logits"])
    ref_feat2, ref_logits2 = textcnn_reference(ids2, params, min_gram, max_gram,
                                               filters)
    feat_err2 = float(jnp.max(jnp.abs(out2["conv_out"] - ref_feat2)))
    logit_err2 = float(jnp.max(jnp.abs(out2["logits"] - ref_logits2)))
    assert feat_err2 < 2e-3, f"conv feature mismatch (grid>1): {feat_err2}"
    assert logit_err2 < 5e-3, f"logit mismatch (grid>1): {logit_err2}"
    assert out2["logits"].shape == (B2, output_dim)

    print("KERNEL_OK")
</pallas_src>

<mosaic_0001>
module attributes {stable_mosaic.version = 11 : i64} {
  func.func @kernel(%arg0: i32, %arg1: memref<128x32xbf16, #tpu.memory_space<vmem>>, %arg2: memref<128x128xbf16, #tpu.memory_space<vmem>>, %arg3: memref<1x128xf32, #tpu.memory_space<vmem>>, %arg4: memref<16x128xf32, #tpu.memory_space<vmem>>, %arg5: memref<8x128xf32, #tpu.memory_space<vmem>>) attributes {dimension_semantics = [#tpu.dimension_semantics<parallel>], iteration_bounds = array<i64: 1>, scalar_prefetch = 0 : i64, scratch_operands = 0 : i64, tpu.core_type = #tpu.core_type<tc>, window_params = [{transform_indices = @transform_0, window_bounds = array<i64: 128, 32>}, {pipeline_mode = #tpu.pipeline_mode<synchronous>, transform_indices = @transform_1, window_bounds = array<i64: 128, 128>}, {pipeline_mode = #tpu.pipeline_mode<synchronous>, transform_indices = @transform_2, window_bounds = array<i64: 1, 128>}, {pipeline_mode = #tpu.pipeline_mode<synchronous>, transform_indices = @transform_3, window_bounds = array<i64: 16, 128>}, {transform_indices = @transform_4, window_bounds = array<i64: 8, 128>}]} {
    %c0 = arith.constant 0 : index
    %c0_0 = arith.constant 0 : index
    %0 = vector.load %arg1[%c0, %c0_0] : memref<128x32xbf16, #tpu.memory_space<vmem>>, vector<128x32xbf16>
    %1 = arith.extf %0 : vector<128x32xbf16> to vector<128x32xf32>
    %c127_i32 = arith.constant 127 : i32
    %2 = tpu.dynamic_rotate %1 by %c127_i32 dim 0 : vector<128x32xf32>, i32 -> vector<128x32xf32>
    %c126_i32 = arith.constant 126 : i32
    %3 = tpu.dynamic_rotate %1 by %c126_i32 dim 0 : vector<128x32xf32>, i32 -> vector<128x32xf32>
    %c125_i32 = arith.constant 125 : i32
    %4 = tpu.dynamic_rotate %1 by %c125_i32 dim 0 : vector<128x32xf32>, i32 -> vector<128x32xf32>
    %5 = tpu.concatenate %1, %2, %3, %4 in 1 : vector<128x32xf32>, vector<128x32xf32>, vector<128x32xf32>, vector<128x32xf32> -> vector<128x128xf32>
    %6 = arith.truncf %5 : vector<128x128xf32> to vector<128x128xbf16>
    %c0_1 = arith.constant 0 : index
    %c0_2 = arith.constant 0 : index
    %7 = vector.load %arg2[%c0_1, %c0_2] : memref<128x128xbf16, #tpu.memory_space<vmem>>, vector<128x128xbf16>
    %cst = arith.constant dense<0.000000e+00> : vector<128x128xf32>
    %8 = tpu.matmul %6, %7, %cst {dimension_numbers = #tpu.dot_dimension_numbers<[1], [0], [0], [1], [0, 0, 1, 1], [], []>} : vector<128x128xbf16>, vector<128x128xbf16>, vector<128x128xf32> -> vector<128x128xf32>
    %c0_3 = arith.constant 0 : index
    %c0_4 = arith.constant 0 : index
    %9 = vector.load %arg3[%c0_3, %c0_4] : memref<1x128xf32, #tpu.memory_space<vmem>>, vector<1x128xf32>
    %10 = vector.broadcast %9 : vector<1x128xf32> to vector<128x128xf32>
    %11 = arith.addf %8, %10 : vector<128x128xf32>
    %cst_5 = arith.constant 0.000000e+00 : f32
    %12 = vector.broadcast %cst_5 : f32 to vector<128x128xf32>
    %13 = arith.maximumf %11, %12 : vector<128x128xf32>
    %14 = vector.shape_cast %13 : vector<128x128xf32> to vector<8x16x128xf32>
    %c0_6 = arith.constant 0 : index
    %c0_7 = arith.constant 0 : index
    %15 = vector.load %arg4[%c0_6, %c0_7] : memref<16x128xf32, #tpu.memory_space<vmem>>, vector<16x128xf32>
    %16 = vector.shape_cast %15 : vector<16x128xf32> to vector<1x16x128xf32>
    %17 = vector.broadcast %16 : vector<1x16x128xf32> to vector<8x16x128xf32>
    %18 = arith.mulf %14, %17 : vector<8x16x128xf32>
    %cst_8 = arith.constant dense<0xFF800000> : vector<8x128xf32>
    %19 = vector.multi_reduction <maximumf>, %18, %cst_8 [1] : vector<8x16x128xf32> to vector<8x128xf32>
    %c0_9 = arith.constant 0 : index
    %c0_10 = arith.constant 0 : index
    %20 = vector.load %arg5[%c0_9, %c0_10] : memref<8x128xf32, #tpu.memory_space<vmem>>, vector<8x128xf32>
    tpu.vector_store %arg5[%c0_9, %c0_10], %19 {strides = array<i32>} : memref<8x128xf32, #tpu.memory_space<vmem>>, vector<8x128xf32>,
    return
  }
  func.func @transform_0(%arg0: i32) -> (i32, i32) {
    %c0_i32 = arith.constant 0 : i32
    %c0_i32_0 = arith.constant 0 : i32
    return %arg0, %c0_i32 : i32, i32
  }
  func.func @transform_1(%arg0: i32) -> (i32, i32) {
    %c0_i32 = arith.constant 0 : i32
    %c0_i32_0 = arith.constant 0 : i32
    %c0_i32_1 = arith.constant 0 : i32
    return %c0_i32, %c0_i32_0 : i32, i32
  }
  func.func @transform_2(%arg0: i32) -> (i32, i32) {
    %c0_i32 = arith.constant 0 : i32
    %c0_i32_0 = arith.constant 0 : i32
    %c0_i32_1 = arith.constant 0 : i32
    return %c0_i32, %c0_i32_0 : i32, i32
  }
  func.func @transform_3(%arg0: i32) -> (i32, i32) {
    %c0_i32 = arith.constant 0 : i32
    %c0_i32_0 = arith.constant 0 : i32
    %c0_i32_1 = arith.constant 0 : i32
    return %c0_i32, %c0_i32_0 : i32, i32
  }
  func.func @transform_4(%arg0: i32) -> (i32, i32) {
    %c0_i32 = arith.constant 0 : i32
    %c0_i32_0 = arith.constant 0 : i32
    return %arg0, %c0_i32 : i32, i32
  }
}

</mosaic_0001>

<bundles_post_ra>
// kernel: tpu_custom_call.1
= control target key start
LH: loop header
LB: loop body
LE: loop exit
PB: predicated region body
PF: predicated region fallthrough
CT: control target
= control target key end

     0   :  { %v67_v2 = vlaneseq  ;;  %s965_s7 = smov 64   ;;  %s966_s8 = smov 32   ;;  %s1409_s0 = inlined_call_operand.vmem [shape: bf16[128,32], index: 0, kind: input, shape index: {}]   ;;  %s1410_s1 = inlined_call_operand.vmem [shape: bf16[128,128], index: 1, kind: input, shape index: {}]   ;;  %s1411_s2 = inlined_call_operand.vmem [shape: f32[1,128], index: 2, kind: input, shape index: {}]   ;;  %s1412_s3 = inlined_call_operand.vmem [shape: f32[16,128], index: 3, kind: input, shape index: {}]   ;;  %s1413_s4 = inlined_call_operand.hbm [shape: f32[8,128], index: 4, kind: output, shape index: {}]  }
   0x1   :  { %v709_v0 = vld [vmem:[%s1409_s0] sm:$0xff]   ;;  %v740_v1 = vld [vmem:[%s1409_s0 + $0x8] sm:$0xff]   ;;  %v1003_v3 = vld [vmem:[%s1409_s0 + $0x10] sm:$0xff]  }
   0x2   :  { %v1005_v4 = vunpack.c.l.bf16 %v709_v0  ;;  %v1007_v5 = vunpack.c.h.bf16 %v709_v0  ;;  %v1009_v6 = vunpack.c.l.bf16 %v740_v1  ;;  %v1011_v7 = vunpack.c.h.bf16 %v740_v1  ;;  %v744_v8 = vld [vmem:[%s1409_s0 + $0x28] sm:$0xff]   ;;  %v935_v19 = vld [vmem:[%s1410_s1 + $0x38] sm:$0xff]   ;;  %v936_v20 = vld [vmem:[%s1410_s1 + $0x30] sm:$0xff]  }
   0x3   :  { %v1016_v9 = vshrl.u32 %v67_v2, 7  ;;  %v1019_v10 = vunpack.c.l.bf16 %v1003_v3  ;;  %v1021_v11 = vunpack.c.l.bf16 %v744_v8  ;;  %v1023_v12 = vunpack.c.h.bf16 %v744_v8  ;;  %v1050_v25 = vld [vmem:[%s1409_s0 + $0x30] sm:$0xff]   ;;  %v743_v30 = vld [vmem:[%s1409_s0 + $0x20] sm:$0xff]   ;;  %763 = vmatprep.subr.bf16.mxu0 %v935_v19  ;;  %795 = vmatprep.subr.bf16.mxu1 %v935_v19  ;;  %v937_v35 = vld [vmem:[%s1410_s1 + $0x28] sm:$0xff]  }
   0x4   :  { %v86_v13 = vrot.slane %v1005_v4, 2  ;;  %v87_v14 = vrot.slane %v1007_v5, 2  ;;  %v88_v15 = vrot.slane %v1009_v6, 2  ;;  %v51_v16 = vrot.slane %v1005_v4, 1  ;;  %764 = vmatpush3.bf16.msra.mxu0 %v935_v19  ;;  %803 = vmatpush3.bf16.msra.mxu1 %v935_v19  ;;  %v938_v55 = vld [vmem:[%s1410_s1 + $0x20] sm:$0xff]  }
   0x5   :  { %vm102_vm0 = vcmp.lt.s32.totalorder %v1016_v9, 6  ;;  %v52_v17 = vrot.slane %v1007_v5, 1  ;;  %v53_v18 = vrot.slane %v1009_v6, 1  ;;  %vm69_vm1 = vcmp.lt.s32.totalorder %v1016_v9, 7  ;;  %765 = vmatprep.subr.bf16.mxu0 %v936_v20  ;;  %796 = vmatprep.subr.bf16.mxu1 %v936_v20 }
   0x6   :  { %v116_v21 = vsel %vm102_vm0, %v87_v14, %v88_v15  ;;  %v117_v22 = vsel %vm102_vm0, %v86_v13, %v87_v14  ;;  %v89_v23 = vrot.slane %v1011_v7, 2  ;;  %v90_v24 = vrot.slane %v1019_v10, 2 }
   0x7   :  { %v825_v26 = vpack.i.bf16 %v116_v21, %v117_v22  ;;  %v83_v27 = vsel %vm69_vm1, %v52_v17, %v53_v18  ;;  %v84_v28 = vsel %vm69_vm1, %v51_v16, %v52_v17  ;;  %v54_v29 = vrot.slane %v1011_v7, 1 }
   0x8   :  { %v815_v31 = vpack.i.bf16 %v83_v27, %v84_v28  ;;  %v114_v32 = vsel %vm102_vm0, %v89_v23, %v90_v24  ;;  %v115_v33 = vsel %vm102_vm0, %v88_v15, %v89_v23  ;;  %v55_v34 = vrot.slane %v1019_v10, 1  ;;  %766 = vmatpush3.bf16.msra.mxu0 %v936_v20  ;;  %804 = vmatpush3.bf16.msra.mxu1 %v936_v20 }
   0x9   :  { %826 = vrot.lane.b32.xlu1 %v825_v26, %s965_s7  ;;  %v830_v36 = vpack.i.bf16 %v114_v32, %v115_v33  ;;  %v82_v37 = vsel %vm69_vm1, %v53_v18, %v54_v29  ;;  %v121_v38 = vrot.slane %v1009_v6, 3  ;;  %v122_v39 = vrot.slane %v1011_v7, 3  ;;  %767 = vmatprep.subr.bf16.mxu0 %v937_v35 }
   0xa   :  { %816 = vrot.lane.b32.xlu0 %v815_v31, %s966_s8  ;;  %v81_v40 = vsel %vm69_vm1, %v54_v29, %v55_v34  ;;  %v123_v41 = vrot.slane %v1019_v10, 3  ;;  %vm135_vm2 = vcmp.lt.s32.totalorder %v1016_v9, 5  ;;  %v119_v42 = vrot.slane %v1005_v4, 3  ;;  %797 = vmatprep.subr.bf16.mxu1 %v937_v35 }
   0xb   :  { %v820_v43 = vpack.i.bf16 %v81_v40, %v82_v37  ;;  %v148_v44 = vsel %vm135_vm2, %v121_v38, %v122_v39  ;;  %v120_v45 = vrot.slane %v1007_v5, 3  ;;  %v1089_v46 = vunpack.c.l.bf16 %v1050_v25 }
   0xc   :  { %v147_v47 = vsel %vm135_vm2, %v122_v39, %v123_v41  ;;  %v61_v48 = vrot.slane %v1021_v11, 1  ;;  %v62_v49 = vrot.slane %v1023_v12, 1  ;;  %v1097_v50 = vunpack.c.l.bf16 %v743_v30 }
   0xd   :  { %831 = vrot.lane.b32.xlu1 %v830_v36, %s965_s7  ;;  %v840_v51 = vpack.i.bf16 %v147_v47, %v148_v44  ;;  %v149_v52 = vsel %vm135_vm2, %v120_v45, %v121_v38  ;;  %v150_v53 = vsel %vm135_vm2, %v119_v42, %v120_v45  ;;  %v63_v54 = vrot.slane %v1089_v46, 1 }
   0xe   :  { %821 = vrot.lane.b32.xlu0 %v820_v43, %s966_s8  ;;  %v835_v56 = vpack.i.bf16 %v149_v52, %v150_v53  ;;  %v74_v57 = vsel %vm69_vm1, %v61_v48, %v62_v49  ;;  %v1113_v58 = vunpack.c.h.bf16 %v743_v30  ;;  %v59_v59 = vrot.slane %v1097_v50, 1 }
   0xf   :  { %9 = vsyncpa [#allocation3], 0  ;;  %v73_v60 = vsel %vm69_vm1, %v62_v49, %v63_v54  ;;  %v96_v61 = vrot.slane %v1021_v11, 2  ;;  %v97_v62 = vrot.slane %v1023_v12, 2  ;;  %v98_v63 = vrot.slane %v1089_v46, 2  ;;  %768 = vmatpush3.bf16.msra.mxu0 %v937_v35  ;;  %805 = vmatpush3.bf16.msra.mxu1 %v937_v35  ;;  %s967_s11 = smov 96  }
  0x10   :  { %v850_v0 = vpack.i.bf16 %v73_v60, %v74_v57  ;;  %v60_v1 = vrot.slane %v1113_v58, 1  ;;  %v94_v2 = vrot.slane %v1097_v50, 2  ;;  %v95_v8 = vrot.slane %v1113_v58, 2  ;;  %v742_v19 = vld [vmem:[%s1409_s0 + $0x18] sm:$0xff]   ;;  %769 = vmatprep.subr.bf16.mxu0 %v938_v55  ;;  %798 = vmatprep.subr.bf16.mxu1 %v938_v55  ;;  %v940_v45 = vld [vmem:[%s1410_s1 + $0x10] sm:$0xff]   ;;  %v941_v49 = vld [vmem:[%s1410_s1 + $0x8] sm:$0xff]  }
  0x11   :  { %841 = vrot.lane.b32.xlu1 %v840_v51, %s967_s11  ;;  %v106_v14 = vsel %vm102_vm0, %v97_v62, %v98_v63  ;;  %v107_v15 = vsel %vm102_vm0, %v96_v61, %v97_v62  ;;  %v129_v17 = vrot.slane %v1021_v11, 3  ;;  %v130_v18 = vrot.slane %v1023_v12, 3  ;;  %v939_v20 = vld [vmem:[%s1410_s1 + $0x18] sm:$0xff]  }
  0x12   :  { %836 = vrot.lane.b32.xlu0 %v835_v56, %s967_s11  ;;  %v75_v21 = vsel %vm69_vm1, %v60_v1, %v61_v48  ;;  %v76_v22 = vsel %vm69_vm1, %v59_v59, %v60_v1  ;;  %v108_v23 = vsel %vm102_vm0, %v95_v8, %v96_v61  ;;  %v109_v27 = vsel %vm102_vm0, %v94_v2, %v95_v8  ;;  %v746_v56 = vld [vmem:[%s1409_s0 + $0x38] sm:$0xff]  }
  0x13   :  { %v845_v26 = vpack.i.bf16 %v75_v21, %v76_v22  ;;  %v131_v28 = vrot.slane %v1089_v46, 3  ;;  %v860_v29 = vpack.i.bf16 %v106_v14, %v107_v15  ;;  %v127_v30 = vrot.slane %v1097_v50, 3  ;;  %770 = vmatpush3.bf16.msra.mxu0 %v938_v55  ;;  %806 = vmatpush3.bf16.msra.mxu1 %v938_v55 }
  0x14   :  { %v128_v31 = vrot.slane %v1113_v58, 3  ;;  %v1155_v32 = vunpack.c.l.bf16 %v742_v19  ;;  %v855_v33 = vpack.i.bf16 %v108_v23, %v109_v27  ;;  %v140_v35 = vsel %vm135_vm2, %v129_v17, %v130_v18  ;;  %771 = vmatprep.subr.bf16.mxu0 %v939_v20  ;;  %799 = vmatprep.subr.bf16.mxu1 %v939_v20 }
  0x15   :  { %851 = vrot.lane.b32.xlu1 %v850_v0, %s966_s8  ;;  %v1160_v36 = vunpack.c.h.bf16 %v742_v19  ;;  %v1163_v37 = vunpack.c.h.bf16 %v1003_v3  ;;  %v139_v38 = vsel %vm135_vm2, %v130_v18, %v131_v28  ;;  %v1204_v1 = vunpack.c.l.bf16 %v746_v56 }
  0x16   :  { %846 = vrot.lane.b32.xlu0 %v845_v26, %s966_s8  ;;  %v141_v39 = vsel %vm135_vm2, %v128_v31, %v129_v17  ;;  %v142_v40 = vsel %vm135_vm2, %v127_v30, %v128_v31  ;;  %v57_v43 = vrot.slane %v1155_v32, 1  ;;  %v870_v47 = vpack.i.bf16 %v139_v38, %v140_v35  ;;  %v942_v17 = vld [vmem:[%s1410_s1] sm:$0xff]  }
  0x17   :  { %v58_v3 = vrot.slane %v1160_v36, 1  ;;  %v56_v44 = vrot.slane %v1163_v37, 1  ;;  %772 = vmatpush3.bf16.msra.mxu0 %v939_v20  ;;  %807 = vmatpush3.bf16.msra.mxu1 %v939_v20  ;;  %v865_v48 = vpack.i.bf16 %v141_v39, %v142_v40  ;;  %v92_v53 = vrot.slane %v1155_v32, 2 }
  0x18   :  { %v93_v55 = vrot.slane %v1160_v36, 2  ;;  %773 = vmatprep.subr.bf16.mxu0 %v940_v45  ;;  %800 = vmatprep.subr.bf16.mxu1 %v940_v45  ;;  %v125_v62 = vrot.slane %v1155_v32, 3  ;;  %v126_v0 = vrot.slane %v1160_v36, 3  ;;  %v1213_v15 = vunpack.c.h.bf16 %v746_v56 }
  0x19   :  { %861 = vrot.lane.b32.xlu1 %v860_v29, %s965_s7  ;;  %v77_v51 = vsel %vm69_vm1, %v58_v3, %v59_v59  ;;  %v78_v52 = vsel %vm69_vm1, %v57_v43, %v58_v3  ;;  %v79_v57 = vsel %vm69_vm1, %v56_v44, %v57_v43  ;;  %v80_v60 = vsel %vm69_vm1, %v55_v34, %v56_v44 }
  0x1a   :  { %856 = vrot.lane.b32.xlu0 %v855_v33, %s965_s7  ;;  %v91_v59 = vrot.slane %v1163_v37, 2  ;;  %v880_v61 = vpack.i.bf16 %v77_v51, %v78_v52  ;;  %v875_v8 = vpack.i.bf16 %v79_v57, %v80_v60  ;;  %v110_v34 = vsel %vm102_vm0, %v93_v55, %v94_v2 }
  0x1b   :  { %774 = vmatpush3.bf16.msra.mxu0 %v940_v45  ;;  %v111_v14 = vsel %vm102_vm0, %v92_v53, %v93_v55  ;;  %808 = vmatpush3.bf16.msra.mxu1 %v940_v45  ;;  %v124_v2 = vrot.slane %v1163_v37, 3  ;;  %v1226_v20 = vunpack.c.h.bf16 %v1050_v25  ;;  %v143_v22 = vsel %vm135_vm2, %v126_v0, %v127_v30 }
  0x1c   :  { %775 = vmatprep.subr.bf16.mxu0 %v941_v49  ;;  %v112_v18 = vsel %vm102_vm0, %v91_v59, %v92_v53  ;;  %v113_v19 = vsel %vm102_vm0, %v90_v24, %v91_v59  ;;  %801 = vmatprep.subr.bf16.mxu1 %v941_v49  ;;  %v890_v21 = vpack.i.bf16 %v110_v34, %v111_v14  ;;  %v65_v24 = vrot.slane %v1204_v1, 1 }
  0x1d   :  { %871 = vrot.lane.b32.xlu1 %v870_v47, %s967_s11  ;;  %v885_v23 = vpack.i.bf16 %v112_v18, %v113_v19  ;;  %v144_v26 = vsel %vm135_vm2, %v125_v62, %v126_v0  ;;  %v66_v27 = vrot.slane %v1213_v15, 1  ;;  %v145_v25 = vsel %vm135_vm2, %v124_v2, %v125_v62 }
  0x1e   :  { %866 = vrot.lane.b32.xlu0 %v865_v48, %s967_s11  ;;  %v146_v29 = vsel %vm135_vm2, %v123_v41, %v124_v2  ;;  %v64_v30 = vrot.slane %v1226_v20, 1  ;;  %v900_v31 = vpack.i.bf16 %v143_v22, %v144_v26  ;;  %v100_v33 = vrot.slane %v1204_v1, 2 }
  0x1f   :  { %776 = vmatpush3.bf16.msra.mxu0 %v941_v49  ;;  %809 = vmatpush3.bf16.msra.mxu1 %v941_v49  ;;  %v895_v35 = vpack.i.bf16 %v145_v25, %v146_v29  ;;  %v70_v38 = vsel %vm69_vm1, %v65_v24, %v66_v27  ;;  %v85_v41 = vsel %vm69_vm1, %v66_v27, %v51_v16  ;;  %v101_v39 = vrot.slane %v1213_v15, 2 }
  0x20   :  { %777 = vmatprep.subr.bf16.mxu0 %v942_v17  ;;  %802 = vmatprep.subr.bf16.mxu1 %v942_v17  ;;  %v71_v40 = vsel %vm69_vm1, %v64_v30, %v65_v24  ;;  %v72_v43 = vsel %vm69_vm1, %v63_v54, %v64_v30  ;;  %v99_v3 = vrot.slane %v1226_v20, 2  ;;  %v910_v44 = vpack.i.bf16 %v85_v41, %v70_v38 }
  0x21   :  { %881 = vrot.lane.b32.xlu1 %v880_v61, %s966_s8  ;;  %v133_v45 = vrot.slane %v1204_v1, 3  ;;  %v905_v16 = vpack.i.bf16 %v71_v40, %v72_v43  ;;  %v103_v47 = vsel %vm102_vm0, %v100_v33, %v101_v39  ;;  %v118_v48 = vsel %vm102_vm0, %v101_v39, %v86_v13 }
  0x22   :  { %876 = vrot.lane.b32.xlu0 %v875_v8, %s966_s8  ;;  %v134_v54 = vrot.slane %v1213_v15, 3  ;;  %v104_v49 = vsel %vm102_vm0, %v99_v3, %v100_v33  ;;  %v105_v51 = vsel %vm102_vm0, %v98_v63, %v99_v3  ;;  %v132_v52 = vrot.slane %v1226_v20, 3 }
  0x23   :  { %778 = vmatpush3.bf16.msra.mxu0 %v942_v17  ;;  %810 = vmatpush3.bf16.msra.mxu1 %v942_v17  ;;  %v920_v53 = vpack.i.bf16 %v118_v48, %v103_v47  ;;  %v915_v55 = vpack.i.bf16 %v104_v49, %v105_v51  ;;  %vm344_vm3 = vcmask 261120   ;;  %vm361_vm4 = vcmask 523264  }
  0x24   :  { %v136_v13 = vsel %vm135_vm2, %v133_v45, %v134_v54  ;;  %v151_v56 = vsel %vm135_vm2, %v134_v54, %v119_v42  ;;  %v137_v57 = vsel %vm135_vm2, %v132_v52, %v133_v45  ;;  %v138_v63 = vsel %vm135_vm2, %v131_v28, %v132_v52 }
  0x25   :  { %891 = vrot.lane.b32.xlu1 %v890_v21, %s965_s7  ;;  %v930_v60 = vpack.i.bf16 %v151_v56, %v136_v13  ;;  %v925_v59 = vpack.i.bf16 %v137_v57, %v138_v63  ;;  %vm378_vm5 = vcmask 785408   ;;  %vm669_vm6 = vcmask 1041409  }
  0x26   :  { %886 = vrot.lane.b32.xlu0 %v885_v23, %s965_s7  ;;  %vm671_vm7 = vcmask 1042434   ;;  %vm673_vm8 = vcmask 1043459   ;;  %vm675_vm9 = vcmask 1044484   ;;  %vm677_vm10 = vcmask 1045509  }
  0x27   :  { %vm679_vm11 = vcmask 1046534   ;;  %vm681_vm12 = vcmask 1047559  }
  0x29   :  { %901 = vrot.lane.b32.xlu1 %v900_v31, %s967_s11 }
  0x2a   :  { %896 = vrot.lane.b32.xlu0 %v895_v35, %s967_s11 }
  0x2d   :  { %911 = vrot.lane.b32.xlu1 %v910_v44, %s966_s8 }
  0x2e   :  { %906 = vrot.lane.b32.xlu0 %v905_v16, %s966_s8 }
  0x31   :  { %921 = vrot.lane.b32.xlu1 %v920_v53, %s965_s7 }
  0x32   :  { %916 = vrot.lane.b32.xlu0 %v915_v55, %s965_s7 }
  0x35   :  { %931 = vrot.lane.b32.xlu1 %v930_v60, %s967_s11 }
  0x36   :  { %926 = vrot.lane.b32.xlu0 %v925_v59, %s967_s11 }
  0x7b   :  { %v827_v61 = vpop.permute.xlu1 %826 }
  0x7c   :  { %v817_v42 = vpop.permute.xlu0 %816  ;;  %v829_v18 = vunpack.i.h.bf16 %v827_v61  ;;  %v828_v19 = vunpack.i.l.bf16 %v827_v61 }
  0x7d   :  { %v819_v62 = vunpack.i.h.bf16 %v817_v42  ;;  %v818_v0 = vunpack.i.l.bf16 %v817_v42 }
  0x7f   :  { %v832_v8 = vpop.permute.xlu1 %831  ;;  %v345_v23 = vsel %vm344_vm3, %v1005_v4, %v818_v0  ;;  %v346_v26 = vsel %vm344_vm3, %v1007_v5, %v819_v62 }
  0x80   :  { %v822_v34 = vpop.permute.xlu0 %821  ;;  %v834_v14 = vunpack.i.h.bf16 %v832_v8  ;;  %v833_v9 = vunpack.i.l.bf16 %v832_v8 }
  0x81   :  { %v824_v28 = vunpack.i.h.bf16 %v822_v34  ;;  %v823_v17 = vunpack.i.l.bf16 %v822_v34 }
  0x83   :  { %v348_v2 = vsel %vm344_vm3, %v1011_v7, %v824_v28  ;;  %v347_v21 = vsel %vm344_vm3, %v1009_v6, %v823_v17  ;;  %v842_v22 = vpop.permute.xlu1 %841  ;;  %v362_v7 = vsel %vm361_vm4, %v345_v23, %v828_v19  ;;  %v363_v6 = vsel %vm361_vm4, %v346_v26, %v829_v18 }
  0x84   :  { %v844_v24 = vunpack.i.h.bf16 %v842_v22  ;;  %v843_v27 = vunpack.i.l.bf16 %v842_v22  ;;  %v837_v25 = vpop.permute.xlu0 %836  ;;  %v364_v31 = vsel %vm361_vm4, %v347_v21, %v833_v9  ;;  %v365_v33 = vsel %vm361_vm4, %v348_v2, %v834_v14 }
  0x85   :  { %v839_v29 = vunpack.i.h.bf16 %v837_v25  ;;  %v838_v30 = vunpack.i.l.bf16 %v837_v25 }
  0x86   :  { %v381_v35 = vsel %vm378_vm5, %v364_v31, %v843_v27  ;;  %v382_v4 = vsel %vm378_vm5, %v365_v33, %v844_v24 }
  0x87   :  { %v852_v38 = vpop.permute.xlu1 %851  ;;  %v379_v5 = vsel %vm378_vm5, %v362_v7, %v838_v30  ;;  %v380_v41 = vsel %vm378_vm5, %v363_v6, %v839_v29  ;;  %v396_v39 = vpack.c.bf16 %v382_v4, %v381_v35 }
  0x88   :  { %v847_v40 = vpop.permute.xlu0 %846  ;;  %v395_v43 = vpack.c.bf16 %v380_v41, %v379_v5  ;;  %v854_v3 = vunpack.i.h.bf16 %v852_v38  ;;  %v853_v44 = vunpack.i.l.bf16 %v852_v38 }
  0x89   :  { %v849_v16 = vunpack.i.h.bf16 %v847_v40  ;;  %v848_v47 = vunpack.i.l.bf16 %v847_v40 }
  0x8a   :  { %779 = vmatprep.mubr.bf16.mxu0 %v395_v43  ;;  %v356_v53 = vsel %vm344_vm3, %v1023_v12, %v854_v3  ;;  %v355_v55 = vsel %vm344_vm3, %v1021_v11, %v853_v44 }
  0x8b   :  { %780 = vmatmul.mubr.bf16.vlgmr.msra.gmra.mxu0 %v396_v39  ;;  %v862_v45 = vpop.permute.xlu1 %861  ;;  %v353_v60 = vsel %vm344_vm3, %v1097_v50, %v848_v47  ;;  %v354_v59 = vsel %vm344_vm3, %v1113_v58, %v849_v16 }
  0x8c   :  { %v857_v48 = vpop.permute.xlu0 %856  ;;  %v864_v54 = vunpack.i.h.bf16 %v862_v45  ;;  %v863_v49 = vunpack.i.l.bf16 %v862_v45 }
  0x8d   :  { %v859_v51 = vunpack.i.h.bf16 %v857_v48  ;;  %v858_v52 = vunpack.i.l.bf16 %v857_v48 }
  0x8e   :  { %v372_v61 = vsel %vm361_vm4, %v355_v55, %v863_v49  ;;  %v373_v42 = vsel %vm361_vm4, %v356_v53, %v864_v54 }
  0x8f   :  { %v872_v13 = vpop.permute.xlu1 %871  ;;  %v370_v12 = vsel %vm361_vm4, %v353_v60, %v858_v52  ;;  %v371_v11 = vsel %vm361_vm4, %v354_v59, %v859_v51 }
  0x90   :  { %v874_v56 = vunpack.i.h.bf16 %v872_v13  ;;  %v873_v57 = vunpack.i.l.bf16 %v872_v13  ;;  %v867_v63 = vpop.permute.xlu0 %866 }
  0x91   :  { %v869_v62 = vunpack.i.h.bf16 %v867_v63  ;;  %v868_v0 = vunpack.i.l.bf16 %v867_v63 }
  0x92   :  { %v389_v8 = vsel %vm378_vm5, %v372_v61, %v873_v57  ;;  %v390_v34 = vsel %vm378_vm5, %v373_v42, %v874_v56 }
  0x93   :  { %v882_v14 = vpop.permute.xlu1 %881  ;;  %v387_v50 = vsel %vm378_vm5, %v370_v12, %v868_v0  ;;  %v388_v9 = vsel %vm378_vm5, %v371_v11, %v869_v62  ;;  %v400_v58 = vpack.c.bf16 %v390_v34, %v389_v8 }
  0x94   :  { %v877_v28 = vpop.permute.xlu0 %876  ;;  %v399_v17 = vpack.c.bf16 %v388_v9, %v387_v50  ;;  %v884_v18 = vunpack.i.h.bf16 %v882_v14  ;;  %v883_v19 = vunpack.i.l.bf16 %v882_v14 }
  0x95   :  { %v879_v21 = vunpack.i.h.bf16 %v877_v28  ;;  %v878_v22 = vunpack.i.l.bf16 %v877_v28 }
  0x96   :  { %787 = vmatprep.mubr.bf16.mxu1 %v399_v17  ;;  %v352_v29 = vsel %vm344_vm3, %v1160_v36, %v884_v18  ;;  %v351_v30 = vsel %vm344_vm3, %v1155_v32, %v883_v19 }
  0x97   :  { %788 = vmatmul.mubr.bf16.vlgmr.msra.gmra.mxu1 %v400_v58  ;;  %v892_v2 = vpop.permute.xlu1 %891  ;;  %v350_v33 = vsel %vm344_vm3, %v1163_v37, %v879_v21  ;;  %v349_v7 = vsel %vm344_vm3, %v1019_v10, %v878_v22 }
  0x98   :  { %v887_v23 = vpop.permute.xlu0 %886  ;;  %v894_v26 = vunpack.i.h.bf16 %v892_v2  ;;  %v893_v24 = vunpack.i.l.bf16 %v892_v2  ;;  %v1362_v2 = vld [vmem:[%s1411_s2] ss:$0 sm:$0xff] }
  0x99   :  { %v889_v27 = vunpack.i.h.bf16 %v887_v23  ;;  %v888_v25 = vunpack.i.l.bf16 %v887_v23 }
  0x9a   :  { %v368_v38 = vsel %vm361_vm4, %v351_v30, %v893_v24  ;;  %v369_v5 = vsel %vm361_vm4, %v352_v29, %v894_v26 }
  0x9b   :  { %v902_v31 = vpop.permute.xlu1 %901  ;;  %v366_v36 = vsel %vm361_vm4, %v349_v7, %v888_v25  ;;  %v367_v32 = vsel %vm361_vm4, %v350_v33, %v889_v27  ;;  %v1371_v7 = vld [vmem:[%s1412_s3 + $0x8] sm:$0xff] }
  0x9c   :  { %v904_v6 = vunpack.i.h.bf16 %v902_v31  ;;  %v903_v35 = vunpack.i.l.bf16 %v902_v31  ;;  %v897_v4 = vpop.permute.xlu0 %896 }
  0x9d   :  { %v899_v41 = vunpack.i.h.bf16 %v897_v4  ;;  %v898_v39 = vunpack.i.l.bf16 %v897_v4  ;;  %v1377_v4 = vld [vmem:[%s1412_s3] sm:$0xff]  ;;  %s968_s3 = smov [#allocation2]  }
  0x9e   :  { %v385_v40 = vsel %vm378_vm5, %v368_v38, %v903_v35  ;;  %v386_v37 = vsel %vm378_vm5, %v369_v5, %v904_v6  ;;  %s691_s27 = sshll.u32 %s968_s3, 4  ;;  %s692_s27 = int_to_ptr.vmem [resolvable:$true] %s691_s27 }
  0x9f   :  { %v912_v43 = vpop.permute.xlu1 %911  ;;  %v383_v10 = vsel %vm378_vm5, %v366_v36, %v898_v39  ;;  %v384_v3 = vsel %vm378_vm5, %v367_v32, %v899_v41  ;;  %v398_v44 = vpack.c.bf16 %v386_v37, %v385_v40  ;;  %s943_s28 = scalar_lea.vmem %s692_s27, 128  ;;  %p948_p1 = scmp.lt.s32.totalorder %s692_s27, %s692_s27 }
  0xa0   :  { %v907_v45 = vpop.permute.xlu0 %906  ;;  %v397_v16 = vpack.c.bf16 %v384_v3, %v383_v10  ;;  %v914_v47 = vunpack.i.h.bf16 %v912_v43  ;;  %v913_v48 = vunpack.i.l.bf16 %v912_v43  ;;  %p944_p0 = scmp.ne.s32.totalorder %s692_s27, %s943_s28  ;;  %p949_p2 = scmp.lt.s32.totalorder %s943_s28, %s943_s28 }
  0xa1   :  { %v909_v49 = vunpack.i.h.bf16 %v907_v45  ;;  %v908_v51 = vunpack.i.l.bf16 %v907_v45 }
  0xa2   :  { %783 = vmatprep.mubr.bf16.mxu0 %v397_v16  ;;  %v360_v57 = vsel %vm344_vm3, %v1213_v15, %v914_v47  ;;  %v359_v63 = vsel %vm344_vm3, %v1204_v1, %v913_v48  ;;  %p950_p3 = por %p949_p2, %p948_p1 }
  0xa3   :  { %784 = vmatmul.mubr.bf16.gmra.mxu0 %v398_v44  ;;  %v922_v54 = vpop.permute.xlu1 %921  ;;  %v358_v59 = vsel %vm344_vm3, %v1226_v20, %v909_v49  ;;  %v357_v61 = vsel %vm344_vm3, %v1089_v46, %v908_v51 }
  0xa4   :  { %v917_v52 = vpop.permute.xlu0 %916  ;;  %v924_v53 = vunpack.i.h.bf16 %v922_v54  ;;  %v923_v55 = vunpack.i.l.bf16 %v922_v54  ;;  %p951_p4 = pnand %p950_p3, %p944_p0 }
  0xa5   :  { %v919_v13 = vunpack.i.h.bf16 %v917_v52  ;;  %v918_v56 = vunpack.i.l.bf16 %v917_v52 }
  0xa6   :  { %v376_v12 = vsel %vm361_vm4, %v359_v63, %v923_v55  ;;  %v377_v11 = vsel %vm361_vm4, %v360_v57, %v924_v53 }
  0xa7   :  { %v932_v60 = vpop.permute.xlu1 %931  ;;  %v374_v15 = vsel %vm361_vm4, %v357_v61, %v918_v56  ;;  %v375_v1 = vsel %vm361_vm4, %v358_v59, %v919_v13 }
  0xa8   :  { %v934_v42 = vunpack.i.h.bf16 %v932_v60  ;;  %v933_v62 = vunpack.i.l.bf16 %v932_v60  ;;  %v927_v0 = vpop.permute.xlu0 %926 }
  0xa9   :  { %v929_v8 = vunpack.i.h.bf16 %v927_v0  ;;  %v928_v34 = vunpack.i.l.bf16 %v927_v0 }
  0xaa   :  { %v393_v14 = vsel %vm378_vm5, %v376_v12, %v933_v62  ;;  %v394_v20 = vsel %vm378_vm5, %v377_v11, %v934_v42 }
  0xab   :  { %v391_v50 = vsel %vm378_vm5, %v374_v15, %v928_v34  ;;  %v392_v46 = vsel %vm378_vm5, %v375_v1, %v929_v8  ;;  %v402_v9 = vpack.c.bf16 %v394_v20, %v393_v14 }
  0xac   :  { %v401_v58 = vpack.c.bf16 %v392_v46, %v391_v50 }
  0xae   :  { %791 = vmatprep.mubr.bf16.mxu1 %v401_v58 }
  0xaf   :  { %792 = vmatmul.mubr.bf16.gmra.mxu1 %v402_v9 }
 0x14b   :  { %v781_v28 = vpop.f32.mrf.mxu0 }
 0x14c   :  { %v517_v27 = vadd.f32 %v781_v28, %v1362_v2 }
 0x14d   :  { %v508_v17 = vpop.f32.mrf.mxu0 }
 0x14e   :  { %v509_v23 = vadd.f32 %v1362_v2, %v508_v17  ;;  %v573_v6 = vmax.f32 %v517_v27, 0.0 }
 0x14f   :  { %v782_v18 = vpop.f32.mrf.mxu0 }
 0x150   :  { %v520_v26 = vadd.f32 %v782_v18, %v1362_v2  ;;  %v571_v30 = vmax.f32 %v509_v23, 0.0  ;;  %v591_v36 = vmul.f32 %v1377_v4, %v573_v6 }
 0x151   :  { %v511_v19 = vpop.f32.mrf.mxu0 }
 0x152   :  { %v512_v21 = vadd.f32 %v1362_v2, %v511_v19  ;;  %v574_v31 = vmax.f32 %v520_v26, 0.0  ;;  %v589_v5 = vmul.f32 %v1377_v4, %v571_v30 }
 0x154   :  { %v572_v25 = vmax.f32 %v512_v21, 0.0  ;;  %v592_v41 = vmul.f32 %v1371_v7, %v574_v31 }
 0x156   :  { %v590_v35 = vmul.f32 %v1371_v7, %v572_v25  ;;  %v612_v3 = vmax.f32 %v591_v36, %v592_v41 }
 0x157   :  { %v789_v22 = vpop.f32.mrf.mxu1 }
 0x158   :  { %v605_v32 = vmax.f32 %v589_v5, %v590_v35  ;;  %v549_v44 = vadd.f32 %v789_v22, %v1362_v2  ;;  %v613_v55 = vrot.slane %v612_v3, 4 }
 0x159   :  { %v540_v24 = vpop.f32.mrf.mxu1 }
 0x15a   :  { %v541_v39 = vadd.f32 %v1362_v2, %v540_v24  ;;  %v606_v48 = vrot.slane %v605_v32, 4  ;;  %v581_v13 = vmax.f32 %v549_v44, 0.0  ;;  %v614_v8 = vmax.f32 %v612_v3, %v613_v55 }
 0x15b   :  { %v790_v29 = vpop.f32.mrf.mxu1 }
 0x15c   :  { %v552_v40 = vadd.f32 %v790_v29, %v1362_v2  ;;  %v579_v16 = vmax.f32 %v541_v39, 0.0  ;;  %v607_v61 = vmax.f32 %v605_v32, %v606_v48  ;;  %v599_v34 = vmul.f32 %v1377_v4, %v581_v13 }
 0x15d   :  { %v543_v33 = vpop.f32.mrf.mxu1  ;;  %v615_v17 = vrot.slane %v614_v8, 2 }
 0x15e   :  { %v544_v38 = vadd.f32 %v1362_v2, %v543_v33  ;;  %v582_v54 = vmax.f32 %v552_v40, 0.0  ;;  %v597_v57 = vmul.f32 %v1377_v4, %v579_v16  ;;  %v608_v20 = vrot.slane %v607_v61, 2 }
 0x15f   :  { %v616_v30 = vmax.f32 %v614_v8, %v615_v17 }
 0x160   :  { %v580_v43 = vmax.f32 %v544_v38, 0.0  ;;  %v600_v42 = vmul.f32 %v1371_v7, %v582_v54  ;;  %v609_v26 = vmax.f32 %v607_v61, %v608_v20 }
 0x162   :  { %v598_v51 = vmul.f32 %v1371_v7, %v580_v43  ;;  %v640_v50 = vmax.f32 %v599_v34, %v600_v42  ;;  %v610_v39 = vrot.slane %v609_v26, 1 }
 0x163   :  { %v785_v37 = vpop.f32.mrf.mxu0 }
 0x164   :  { %v533_v10 = vadd.f32 %v785_v37, %v1362_v2  ;;  %v633_v62 = vmax.f32 %v597_v57, %v598_v51  ;;  %v641_v24 = vrot.slane %v640_v50, 4  ;;  %v611_v54 = vmax.f32 %v609_v26, %v610_v39 }
 0x165   :  { %v524_v45 = vpop.f32.mrf.mxu0 }
 0x166   :  { %v525_v47 = vadd.f32 %v1362_v2, %v524_v45  ;;  %v577_v52 = vmax.f32 %v533_v10, 0.0  ;;  %v634_v9 = vrot.slane %v633_v62, 4  ;;  %v642_v36 = vmax.f32 %v640_v50, %v641_v24 }
 0x167   :  { %v786_v49 = vpop.f32.mrf.mxu0  ;;  %v617_v10 = vrot.slane %v616_v30, 1 }
 0x168   :  { %v536_v53 = vadd.f32 %v786_v49, %v1362_v2  ;;  %v575_v63 = vmax.f32 %v525_v47, 0.0  ;;  %v595_v0 = vmul.f32 %v1377_v4, %v577_v52  ;;  %v635_v25 = vmax.f32 %v633_v62, %v634_v9 }
 0x169   :  { %v527_v56 = vpop.f32.mrf.mxu0  ;;  %v643_v49 = vrot.slane %v642_v36, 2  ;;  %v618_v55 = vmax.f32 %v616_v30, %v617_v10 }
 0x16a   :  { %v578_v60 = vmax.f32 %v536_v53, 0.0  ;;  %v528_v59 = vadd.f32 %v1362_v2, %v527_v56  ;;  %v593_v15 = vmul.f32 %v1377_v4, %v575_v63  ;;  %v636_v40 = vrot.slane %v635_v25, 2 }
 0x16b   :  { %v644_v63 = vmax.f32 %v642_v36, %v643_v49 }
 0x16c   :  { %v596_v12 = vmul.f32 %v1371_v7, %v578_v60  ;;  %v576_v11 = vmax.f32 %v528_v59, 0.0  ;;  %v637_v51 = vmax.f32 %v635_v25, %v636_v40  ;;  %v670_v59 = vsel %vm669_vm6, %v618_v55, %v611_v54 }
 0x16e   :  { %v626_v1 = vmax.f32 %v595_v0, %v596_v12  ;;  %v594_v14 = vmul.f32 %v1371_v7, %v576_v11  ;;  %v638_v61 = vrot.slane %v637_v51, 1  ;;  %v645_v12 = vrot.slane %v644_v63, 1 }
 0x16f   :  { %v793_v46 = vpop.f32.mrf.mxu1 }
 0x170   :  { %v627_v58 = vrot.slane %v626_v1, 4  ;;  %v619_v28 = vmax.f32 %v593_v15, %v594_v14  ;;  %v565_v18 = vadd.f32 %v793_v46, %v1362_v2  ;;  %v639_v34 = vmax.f32 %v637_v51, %v638_v61 }
 0x171   :  { %v556_v19 = vpop.f32.mrf.mxu1  ;;  %v646_v50 = vmax.f32 %v644_v63, %v645_v12 }
 0x172   :  { %v628_v21 = vmax.f32 %v626_v1, %v627_v58  ;;  %v620_v22 = vrot.slane %v619_v28, 4  ;;  %v557_v23 = vadd.f32 %v1362_v2, %v556_v19  ;;  %v585_v33 = vmax.f32 %v565_v18, 0.0 }
 0x173   :  { %v794_v27 = vpop.f32.mrf.mxu1 }
 0x174   :  { %v621_v29 = vmax.f32 %v619_v28, %v620_v22  ;;  %v629_v31 = vrot.slane %v628_v21, 2  ;;  %v568_v6 = vadd.f32 %v794_v27, %v1362_v2  ;;  %v583_v5 = vmax.f32 %v557_v23, 0.0 }
 0x175   :  { %v559_v35 = vpop.f32.mrf.mxu1  ;;  %v603_v44 = vmul.f32 %v1377_v4, %v585_v33 }
 0x176   :  { %v622_v38 = vrot.slane %v621_v29, 2  ;;  %v560_v41 = vadd.f32 %v1362_v2, %v559_v35  ;;  %v586_v32 = vmax.f32 %v568_v6, 0.0  ;;  %v630_v3 = vmax.f32 %v628_v21, %v629_v31 }
 0x177   :  { %v601_v47 = vmul.f32 %v1377_v4, %v583_v5 }
 0x178   :  { %v623_v37 = vmax.f32 %v621_v29, %v622_v38  ;;  %v584_v43 = vmax.f32 %v560_v41, 0.0  ;;  %v604_v45 = vmul.f32 %v1371_v7, %v586_v32  ;;  %v631_v13 = vrot.slane %v630_v3, 1 }
 0x17a   :  { %v624_v16 = vrot.slane %v623_v37, 1  ;;  %v602_v48 = vmul.f32 %v1371_v7, %v584_v43  ;;  %v654_v2 = vmax.f32 %v603_v44, %v604_v45  ;;  %v632_v7 = vmax.f32 %v630_v3, %v631_v13 }
 0x17c   :  { %v625_v52 = vmax.f32 %v623_v37, %v624_v16  ;;  %v647_v53 = vmax.f32 %v601_v47, %v602_v48  ;;  %v655_v56 = vrot.slane %v654_v2, 4 }
 0x17e   :  { %v648_v57 = vrot.slane %v647_v53, 4  ;;  %v656_v60 = vmax.f32 %v654_v2, %v655_v56  ;;  %v672_v4 = vsel %vm671_vm7, %v625_v52, %v670_v59 }
 0x17f   :  { %v674_v8 = vsel %vm673_vm8, %v632_v7, %v672_v4 }
 0x180   :  { %v649_v42 = vmax.f32 %v647_v53, %v648_v57  ;;  %v657_v62 = vrot.slane %v656_v60, 2  ;;  %v676_v20 = vsel %vm675_vm9, %v639_v34, %v674_v8 }
 0x181   :  { %v678_v58 = vsel %vm677_vm10, %v646_v50, %v676_v20 }
 0x182   :  { %v650_v0 = vrot.slane %v649_v42, 2  ;;  %v658_v11 = vmax.f32 %v656_v60, %v657_v62 }
 0x184   :  { %v651_v15 = vmax.f32 %v649_v42, %v650_v0  ;;  %v659_v1 = vrot.slane %v658_v11, 1 }
 0x186   :  { %v652_v14 = vrot.slane %v651_v15, 1  ;;  %v660_v9 = vmax.f32 %v658_v11, %v659_v1 }
 0x188   :  { %v653_v46 = vmax.f32 %v651_v15, %v652_v14 }
 0x18a   :  { %v680_v28 = vsel %vm679_vm11, %v653_v46, %v678_v58 }
 0x18b   :  { %v682_v17 = vsel %vm681_vm12, %v660_v9, %v680_v28 }
 0x18c   :  { %684 = vst [vmem:[#allocation2] sm:$0xff] %v682_v17 }
 0x18d   :  { %954 = shalt.err (!%p951_p4)
}
 0x18e   :  { %694 = dma.vmem_to_hbm [thread:$0]  %s692_s27, 128, %s1413_s4, [#allocation3]  }
 0x18f   :  { %963 = dma.done.wait [#allocation3], 128  }
 0x190   :  { %964 = vsyncadd [#allocation3], 4294967168 }
 0x191   :  { %698 = vsyncpa [#allocation3], 1 }

</bundles_post_ra>
